<compile_context>
chip_gen: v6e
topology: v6e:2x2x1
jax: 0.10.0
libtpu: 0.0.40
codegen_flags: <defaults>
</compile_context>

<pallas_src>
import jax
import jax.numpy as jnp
from jax.experimental import pallas as pl
from jax.experimental.pallas import tpu as pltpu

LEAKY_SLOPE = 0.01
BN_EPS = 1e-5
LANE = 128  # TPU lane width; pad feature dims up to this for lane-dense ops


def _bn_fold_leaky(h, gamma, beta):
    """Training-mode BatchNorm1d folded to per-feature scale/shift + LeakyReLU.

    scale = gamma * rsqrt(var + eps);  shift = beta - mean * scale
    => normalized = h * scale + shift   (one mul + one add per element)
    """
    mean = jnp.mean(h, axis=0, keepdims=True)
    var = jnp.mean((h - mean) ** 2, axis=0, keepdims=True)  # biased variance
    scale = gamma * jax.lax.rsqrt(var + BN_EPS)
    shift = beta - mean * scale
    h = h * scale + shift
    return jnp.where(h >= 0, h, LEAKY_SLOPE * h)


def decoder_kernel(x_ref, w1_ref, w2_ref, w3_ref, p_ref, o_ref):
    # p_ref rows: 0=gamma1, 1=beta1, 2=gamma2, 3=beta2, 4=bias3 (lane-padded)
    x = x_ref[...]

    # dec_layer1: Linear (bias cancelled by BN) + BN + LeakyReLU
    h1 = jnp.dot(x, w1_ref[...], preferred_element_type=jnp.float32)
    h1 = _bn_fold_leaky(h1, p_ref[0:1, :], p_ref[1:2, :])

    # dec_layer2: Linear (bias cancelled by BN) + BN + LeakyReLU
    h2 = jnp.dot(h1, w2_ref[...], preferred_element_type=jnp.float32)
    h2 = _bn_fold_leaky(h2, p_ref[2:3, :], p_ref[3:4, :])

    # dec_layer3: Linear + sigmoid (EUP exp path, no explicit divide)
    z = jnp.dot(h2, w3_ref[...], preferred_element_type=jnp.float32) + p_ref[4:5, :]
    o_ref[...] = jax.nn.sigmoid(z).astype(o_ref.dtype)


def _pad2d(a, rows, cols):
    return jnp.pad(a, ((0, rows - a.shape[0]), (0, cols - a.shape[1])))


def decoder_forward(x, params):
    """x: [B, d_in] float32. params: dict of weights/biases/BN affine params."""
    B, d_in = x.shape
    h1 = params["w1"].shape[1]
    h2 = params["w2"].shape[1]
    d_out = params["w3"].shape[1]

    # Zero-pad feature dims to 128 lanes. Padded columns are exact zeros
    # through BN/LeakyReLU and contribute nothing to later layers, so real
    # outputs are unchanged; the kernel's loads/stores become lane-dense.
    w1p = _pad2d(params["w1"], d_in, LANE)
    w2p = _pad2d(params["w2"], LANE, LANE)
    w3p = _pad2d(params["w3"], LANE, LANE)

    # Pack the five small per-feature vectors into a single [8, 128] array
    # (one DMA instead of five). b1/b2 are intentionally NOT passed: BN's
    # mean subtraction cancels them exactly.
    packed = jnp.zeros((8, LANE), jnp.float32)
    packed = packed.at[0, :h1].set(params["g1"].reshape(-1))
    packed = packed.at[1, :h1].set(params["be1"].reshape(-1))
    packed = packed.at[2, :h2].set(params["g2"].reshape(-1))
    packed = packed.at[3, :h2].set(params["be2"].reshape(-1))
    packed = packed.at[4, :d_out].set(params["b3"].reshape(-1))

    vmem_spec = pl.BlockSpec(memory_space=pltpu.MemorySpace.VMEM)
    out_padded = pl.pallas_call(
        decoder_kernel,
        out_shape=jax.ShapeDtypeStruct((B, LANE), jnp.float32),
        in_specs=[vmem_spec] * 5,
        out_specs=vmem_spec,
    )(x, w1p, w2p, w3p, packed)

    return out_padded[:, :d_out]


def init_params(key, d_in, h1, h2, d_out):
    """Matches initialize_weights: Linear weight ~ N(0, 0.02), bias = 0.
    BatchNorm affine params stay at their PyTorch defaults (gamma=1, beta=0)."""
    k1, k2, k3 = jax.random.split(key, 3)
    std = 0.02
    return {
        "w1": std * jax.random.normal(k1, (d_in, h1), jnp.float32),
        "b1": jnp.zeros((1, h1), jnp.float32),
        "g1": jnp.ones((1, h1), jnp.float32),
        "be1": jnp.zeros((1, h1), jnp.float32),
        "w2": std * jax.random.normal(k2, (h1, h2), jnp.float32),
        "b2": jnp.zeros((1, h2), jnp.float32),
        "g2": jnp.ones((1, h2), jnp.float32),
        "be2": jnp.zeros((1, h2), jnp.float32),
        "w3": std * jax.random.normal(k3, (h2, d_out), jnp.float32),
        "b3": jnp.zeros((1, d_out), jnp.float32),
    }


def decoder_reference(x, p):
    """Pure-JAX reference of the same forward pass (for sanity check)."""
    def bn_lrelu(h, g, b):
        m = jnp.mean(h, axis=0, keepdims=True)
        v = jnp.mean((h - m) ** 2, axis=0, keepdims=True)
        h = (h - m) / jnp.sqrt(v + BN_EPS) * g + b
        return jnp.where(h >= 0, h, LEAKY_SLOPE * h)

    h = bn_lrelu(x @ p["w1"] + p["b1"], p["g1"], p["be1"])
    h = bn_lrelu(h @ p["w2"] + p["b2"], p["g2"], p["be2"])
    return jax.nn.sigmoid(h @ p["w3"] + p["b3"])


if __name__ == "__main__":
    B, d_in, h1, h2, d_out = 8, 16, 32, 32, 64

    key = jax.random.PRNGKey(0)
    kx, kp = jax.random.split(key)
    x = jax.random.normal(kx, (B, d_in), jnp.float32)
    params = init_params(kp, d_in, h1, h2, d_out)

    out = decoder_forward(x, params)
    out = jax.block_until_ready(out)

    ref = decoder_reference(x, params)
    assert out.shape == (B, d_out)
    assert jnp.allclose(out, ref, atol=1e-5, rtol=1e-5), "mismatch vs reference"

    print("KERNEL_OK")
</pallas_src>

<mosaic_0001>
module attributes {stable_mosaic.version = 11 : i64} {
  func.func @decoder_kernel(%arg0: memref<8x16xf32, #tpu.memory_space<vmem>>, %arg1: memref<16x128xf32, #tpu.memory_space<vmem>>, %arg2: memref<128x128xf32, #tpu.memory_space<vmem>>, %arg3: memref<128x128xf32, #tpu.memory_space<vmem>>, %arg4: memref<8x128xf32, #tpu.memory_space<vmem>>, %arg5: memref<8x128xf32, #tpu.memory_space<vmem>>) attributes {dimension_semantics = [], scalar_prefetch = 0 : i64, scratch_operands = 0 : i64, tpu.core_type = #tpu.core_type<tc>} {
    %c0 = arith.constant 0 : index
    %c0_0 = arith.constant 0 : index
    %0 = vector.load %arg0[%c0, %c0_0] : memref<8x16xf32, #tpu.memory_space<vmem>>, vector<8x16xf32>
    %c0_1 = arith.constant 0 : index
    %c0_2 = arith.constant 0 : index
    %1 = vector.load %arg1[%c0_1, %c0_2] : memref<16x128xf32, #tpu.memory_space<vmem>>, vector<16x128xf32>
    %cst = arith.constant dense<0.000000e+00> : vector<8x128xf32>
    %2 = tpu.matmul %0, %1, %cst {dimension_numbers = #tpu.dot_dimension_numbers<[1], [0], [0], [1], [0, 0, 1, 1], [], []>} : vector<8x16xf32>, vector<16x128xf32>, vector<8x128xf32> -> vector<8x128xf32>
    %c0_3 = arith.constant 0 : index
    %c0_4 = arith.constant 0 : index
    %3 = vector.load %arg4[%c0_3, %c0_4] : memref<8x128xf32, #tpu.memory_space<vmem>>, vector<1x128xf32>
    %c1 = arith.constant 1 : index
    %c0_5 = arith.constant 0 : index
    %4 = vector.load %arg4[%c1, %c0_5] : memref<8x128xf32, #tpu.memory_space<vmem>>, vector<1x128xf32>
    %cst_6 = arith.constant dense<0.000000e+00> : vector<128xf32>
    %5 = vector.multi_reduction <add>, %2, %cst_6 [0] : vector<8x128xf32> to vector<128xf32>
    %6 = vector.shape_cast %5 : vector<128xf32> to vector<1x128xf32>
    %cst_7 = arith.constant 8.000000e+00 : f32
    %7 = vector.broadcast %cst_7 : f32 to vector<1x128xf32>
    %8 = arith.divf %6, %7 : vector<1x128xf32>
    %9 = vector.broadcast %8 : vector<1x128xf32> to vector<8x128xf32>
    %10 = arith.subf %2, %9 : vector<8x128xf32>
    %11 = arith.mulf %10, %10 : vector<8x128xf32>
    %cst_8 = arith.constant dense<0.000000e+00> : vector<128xf32>
    %12 = vector.multi_reduction <add>, %11, %cst_8 [0] : vector<8x128xf32> to vector<128xf32>
    %13 = vector.shape_cast %12 : vector<128xf32> to vector<1x128xf32>
    %cst_9 = arith.constant 8.000000e+00 : f32
    %14 = vector.broadcast %cst_9 : f32 to vector<1x128xf32>
    %15 = arith.divf %13, %14 : vector<1x128xf32>
    %cst_10 = arith.constant 9.99999974E-6 : f32
    %16 = vector.broadcast %cst_10 : f32 to vector<1x128xf32>
    %17 = arith.addf %15, %16 : vector<1x128xf32>
    %18 = math.rsqrt %17 : vector<1x128xf32>
    %19 = arith.mulf %3, %18 : vector<1x128xf32>
    %20 = arith.mulf %8, %19 : vector<1x128xf32>
    %21 = arith.subf %4, %20 : vector<1x128xf32>
    %22 = vector.broadcast %19 : vector<1x128xf32> to vector<8x128xf32>
    %23 = arith.mulf %2, %22 : vector<8x128xf32>
    %24 = vector.broadcast %21 : vector<1x128xf32> to vector<8x128xf32>
    %25 = arith.addf %23, %24 : vector<8x128xf32>
    %cst_11 = arith.constant 0.000000e+00 : f32
    %26 = vector.broadcast %cst_11 : f32 to vector<8x128xf32>
    %27 = arith.cmpf oge, %25, %26 : vector<8x128xf32>
    %cst_12 = arith.constant 0.00999999977 : f32
    %28 = vector.broadcast %cst_12 : f32 to vector<8x128xf32>
    %29 = arith.mulf %28, %25 : vector<8x128xf32>
    %30 = arith.select %27, %25, %29 : vector<8x128xi1>, vector<8x128xf32>
    %c0_13 = arith.constant 0 : index
    %c0_14 = arith.constant 0 : index
    %31 = vector.load %arg2[%c0_13, %c0_14] : memref<128x128xf32, #tpu.memory_space<vmem>>, vector<128x128xf32>
    %cst_15 = arith.constant dense<0.000000e+00> : vector<8x128xf32>
    %32 = tpu.matmul %30, %31, %cst_15 {dimension_numbers = #tpu.dot_dimension_numbers<[1], [0], [0], [1], [0, 0, 1, 1], [], []>} : vector<8x128xf32>, vector<128x128xf32>, vector<8x128xf32> -> vector<8x128xf32>
    %c2 = arith.constant 2 : index
    %c0_16 = arith.constant 0 : index
    %33 = vector.load %arg4[%c2, %c0_16] : memref<8x128xf32, #tpu.memory_space<vmem>>, vector<1x128xf32>
    %c3 = arith.constant 3 : index
    %c0_17 = arith.constant 0 : index
    %34 = vector.load %arg4[%c3, %c0_17] : memref<8x128xf32, #tpu.memory_space<vmem>>, vector<1x128xf32>
    %cst_18 = arith.constant dense<0.000000e+00> : vector<128xf32>
    %35 = vector.multi_reduction <add>, %32, %cst_18 [0] : vector<8x128xf32> to vector<128xf32>
    %36 = vector.shape_cast %35 : vector<128xf32> to vector<1x128xf32>
    %cst_19 = arith.constant 8.000000e+00 : f32
    %37 = vector.broadcast %cst_19 : f32 to vector<1x128xf32>
    %38 = arith.divf %36, %37 : vector<1x128xf32>
    %39 = vector.broadcast %38 : vector<1x128xf32> to vector<8x128xf32>
    %40 = arith.subf %32, %39 : vector<8x128xf32>
    %41 = arith.mulf %40, %40 : vector<8x128xf32>
    %cst_20 = arith.constant dense<0.000000e+00> : vector<128xf32>
    %42 = vector.multi_reduction <add>, %41, %cst_20 [0] : vector<8x128xf32> to vector<128xf32>
    %43 = vector.shape_cast %42 : vector<128xf32> to vector<1x128xf32>
    %cst_21 = arith.constant 8.000000e+00 : f32
    %44 = vector.broadcast %cst_21 : f32 to vector<1x128xf32>
    %45 = arith.divf %43, %44 : vector<1x128xf32>
    %cst_22 = arith.constant 9.99999974E-6 : f32
    %46 = vector.broadcast %cst_22 : f32 to vector<1x128xf32>
    %47 = arith.addf %45, %46 : vector<1x128xf32>
    %48 = math.rsqrt %47 : vector<1x128xf32>
    %49 = arith.mulf %33, %48 : vector<1x128xf32>
    %50 = arith.mulf %38, %49 : vector<1x128xf32>
    %51 = arith.subf %34, %50 : vector<1x128xf32>
    %52 = vector.broadcast %49 : vector<1x128xf32> to vector<8x128xf32>
    %53 = arith.mulf %32, %52 : vector<8x128xf32>
    %54 = vector.broadcast %51 : vector<1x128xf32> to vector<8x128xf32>
    %55 = arith.addf %53, %54 : vector<8x128xf32>
    %cst_23 = arith.constant 0.000000e+00 : f32
    %56 = vector.broadcast %cst_23 : f32 to vector<8x128xf32>
    %57 = arith.cmpf oge, %55, %56 : vector<8x128xf32>
    %cst_24 = arith.constant 0.00999999977 : f32
    %58 = vector.broadcast %cst_24 : f32 to vector<8x128xf32>
    %59 = arith.mulf %58, %55 : vector<8x128xf32>
    %60 = arith.select %57, %55, %59 : vector<8x128xi1>, vector<8x128xf32>
    %c0_25 = arith.constant 0 : index
    %c0_26 = arith.constant 0 : index
    %61 = vector.load %arg3[%c0_25, %c0_26] : memref<128x128xf32, #tpu.memory_space<vmem>>, vector<128x128xf32>
    %cst_27 = arith.constant dense<0.000000e+00> : vector<8x128xf32>
    %62 = tpu.matmul %60, %61, %cst_27 {dimension_numbers = #tpu.dot_dimension_numbers<[1], [0], [0], [1], [0, 0, 1, 1], [], []>} : vector<8x128xf32>, vector<128x128xf32>, vector<8x128xf32> -> vector<8x128xf32>
    %c4 = arith.constant 4 : index
    %c0_28 = arith.constant 0 : index
    %63 = vector.load %arg4[%c4, %c0_28] : memref<8x128xf32, #tpu.memory_space<vmem>>, vector<1x128xf32>
    %64 = vector.broadcast %63 : vector<1x128xf32> to vector<8x128xf32>
    %65 = arith.addf %62, %64 : vector<8x128xf32>
    %66 = arith.negf %65 : vector<8x128xf32>
    %67 = math.exp %66 : vector<8x128xf32>
    %cst_29 = arith.constant 1.000000e+00 : f32
    %68 = vector.broadcast %cst_29 : f32 to vector<8x128xf32>
    %69 = arith.addf %68, %67 : vector<8x128xf32>
    %70 = arith.divf %68, %69 : vector<8x128xf32>
    %c0_30 = arith.constant 0 : index
    %c0_31 = arith.constant 0 : index
    %71 = vector.load %arg5[%c0_30, %c0_31] : memref<8x128xf32, #tpu.memory_space<vmem>>, vector<8x128xf32>
    tpu.vector_store %arg5[%c0_30, %c0_31], %70 {strides = array<i32>} : memref<8x128xf32, #tpu.memory_space<vmem>>, vector<8x128xf32>,
    return
  }
}

</mosaic_0001>

<bundles_post_ra>
// kernel: tpu_custom_call.1
= control target key start
LH: loop header
LB: loop body
LE: loop exit
PB: predicated region body
PF: predicated region fallthrough
CT: control target
= control target key end

     0   :  { %10 = vsyncpa [#allocation3], 0  ;;  %s809_s0 = inlined_call_operand.hbm [shape: f32[8,16], index: 0, kind: input, shape index: {}]   ;;  %s810_s1 = inlined_call_operand.hbm [shape: f32[16,128], index: 1, kind: input, shape index: {}]   ;;  %s811_s2 = inlined_call_operand.hbm [shape: f32[128,128], index: 2, kind: input, shape index: {}]   ;;  %s812_s3 = inlined_call_operand.hbm [shape: f32[128,128], index: 3, kind: input, shape index: {}]   ;;  %s813_s4 = inlined_call_operand.hbm [shape: f32[8,128], index: 4, kind: input, shape index: {}]   ;;  %s814_s5 = inlined_call_operand.hbm [shape: f32[8,128], index: 5, kind: output, shape index: {}]  }
   0x1   :  { %11 = vsyncpa [#allocation6], 0 }
   0x2   :  { %12 = vsyncpa [#allocation9], 0 }
   0x3   :  { %13 = vsyncpa [#allocation4], 0  ;;  %s699_s18 = smov [#allocation5]  }
   0x4   :  { %s29_s19 = sshll.u32 %s699_s18, 4  ;;  %s30_s19 = int_to_ptr.vmem [resolvable:$true] %s29_s19 }
   0x5   :  { %s579_s20 = scalar_lea.vmem %s30_s19, 256  ;;  %p584_p1 = scmp.lt.s32.totalorder %s30_s19, %s30_s19 }
   0x6   :  { %p580_p0 = scmp.ne.s32.totalorder %s30_s19, %s579_s20  ;;  %p585_p2 = scmp.lt.s32.totalorder %s579_s20, %s579_s20 }
   0x8   :  { %p586_p3 = por %p585_p2, %p584_p1 }
   0xa   :  { %p587_p4 = pnand %p586_p3, %p580_p0 }
   0xc   :  { %590 = shalt.err (!%p587_p4)
}
   0xd   :  { %s700_s21 = smov 128   ;;  %s701_s22 = smov 8  }
   0xe   :  { %35 = dma.hbm_to_vmem [thread:$0]  %s810_s1, 256, %s30_s19, [#allocation6], %s700_s21, %s700_s21, %s701_s22  }
   0xf   :  { %s702_s25 = smov [#allocation8]   ;;  %s703_s27 = smov [#allocation2]  }
  0x10   :  { %s53_s26 = sshll.u32 %s702_s25, 4  ;;  %s20_s28 = sshll.u32 %s703_s27, 4  ;;  %s54_s26 = int_to_ptr.vmem [resolvable:$true] %s53_s26  ;;  %s21_s28 = int_to_ptr.vmem [resolvable:$true] %s20_s28 }
  0x11   :  { %s599_s29 = scalar_lea.vmem %s54_s26, 2048  ;;  %p604_p6 = scmp.lt.s32.totalorder %s54_s26, %s54_s26 }
  0x12   :  { %p600_p5 = scmp.ne.s32.totalorder %s54_s26, %s599_s29  ;;  %p605_p7 = scmp.lt.s32.totalorder %s599_s29, %s599_s29 }
  0x14   :  { %p606_p8 = por %p605_p7, %p604_p6 }
  0x16   :  { %p607_p9 = pnand %p606_p8, %p600_p5 }
  0x18   :  { %610 = shalt.err (!%p607_p9)
}
  0x19   :  { %59 = dma.hbm_to_vmem [thread:$0]  %s812_s3, 2048, %s54_s26, [#allocation9], %s700_s21, %s700_s21, %s701_s22  }
  0x1a   :  { %s619_s1 = scalar_lea.vmem %s21_s28, 128  ;;  %p624_p11 = scmp.lt.s32.totalorder %s21_s28, %s21_s28 }
  0x1b   :  { %p620_p10 = scmp.ne.s32.totalorder %s21_s28, %s619_s1  ;;  %p625_p12 = scmp.lt.s32.totalorder %s619_s1, %s619_s1 }
  0x1d   :  { %p626_p13 = por %p625_p12, %p624_p11 }
  0x1f   :  { %p627_p0 = pnand %p626_p13, %p620_p10 }
  0x21   :  { %630 = shalt.err (!%p627_p0)
}
  0x22   :  { %23 = dma.hbm_to_vmem [thread:$0]  %s809_s0, 128, %s21_s28, [#allocation3]  }
  0x23   :  { %s704_s9 = smov [#allocation7]   ;;  %s705_s11 = smov [#allocation10]  }
  0x24   :  { %s41_s10 = sshll.u32 %s704_s9, 4  ;;  %s66_s12 = sshll.u32 %s705_s11, 4  ;;  %s42_s10 = int_to_ptr.vmem [resolvable:$true] %s41_s10  ;;  %s67_s12 = int_to_ptr.vmem [resolvable:$true] %s66_s12 }
  0x25   :  { %s639_s13 = scalar_lea.vmem %s42_s10, 2048  ;;  %p644_p2 = scmp.lt.s32.totalorder %s42_s10, %s42_s10 }
  0x26   :  { %p640_p1 = scmp.ne.s32.totalorder %s42_s10, %s639_s13  ;;  %p645_p3 = scmp.lt.s32.totalorder %s639_s13, %s639_s13 }
  0x28   :  { %p646_p4 = por %p645_p3, %p644_p2 }
  0x2a   :  { %p647_p5 = pnand %p646_p4, %p640_p1 }
  0x2c   :  { %650 = shalt.err (!%p647_p5)
}
  0x2d   :  { %47 = dma.hbm_to_vmem [thread:$0]  %s811_s2, 2048, %s42_s10, [#allocation6], %s700_s21, %s700_s21, %s701_s22  }
  0x2e   :  { %s659_s0 = scalar_lea.vmem %s67_s12, 128  ;;  %p664_p7 = scmp.lt.s32.totalorder %s67_s12, %s67_s12 }
  0x2f   :  { %p660_p6 = scmp.ne.s32.totalorder %s67_s12, %s659_s0  ;;  %p665_p8 = scmp.lt.s32.totalorder %s659_s0, %s659_s0 }
  0x31   :  { %p666_p9 = por %p665_p8, %p664_p7 }
  0x33   :  { %p667_p10 = pnand %p666_p9, %p660_p6 }
  0x35   :  { %670 = shalt.err (!%p667_p10)
}
  0x36   :  { %69 = dma.hbm_to_vmem [thread:$0]  %s813_s4, 128, %s67_s12, [#allocation9]  }
  0x37   :  { %691 = dma.done.wait [#allocation3], 128  }
  0x38   :  { %692 = vsyncadd [#allocation3], 4294967168 }
  0x39   :  { %693 = dma.done.wait [#allocation6], 2304  }
  0x3a   :  { %694 = vsyncadd [#allocation6], 4294964992 }
  0x3b   :  { %695 = dma.done.wait [#allocation9], 2176  }
  0x3c   :  { %696 = vsyncadd [#allocation9], 4294965120  ;;  %v706_v0 = vmov 0.0   ;;  %vm707_vm0 = vmmov 0   ;;  %v87_v1 = vld [vmem:[#allocation5 + $0x8] sm:$0xff]  ;;  %v86_v2 = vld [vmem:[#allocation5] sm:$0xff]  ;;  %v186_v39 = vlaneseq }
  0x3d   :  { %476 = vmatprep.subr.mxu0 %v706_v0  ;;  %480 = vmatprep.mubr.msk.f32.mxu0 %vm707_vm0, %v706_v0  ;;  %v85_v3 = vld [vmem:[#allocation2] sm:$0xff]  ;;  %vm88_vm1 = vcmask 130048   ;;  %v214_v4 = vld [vmem:[#allocation7 + $0x78] sm:$0xff]  ;;  %v213_v5 = vld [vmem:[#allocation7 + $0x70] sm:$0xff]  ;;  %s708_s2 = smov [#allocation11]  }
  0x3e   :  { %483 = vmatprep.subr.mxu1 %v706_v0  ;;  %515 = vmatprep.mubr.msk.f32.mxu1 %vm707_vm0, %v706_v0  ;;  %v212_v6 = vld [vmem:[#allocation7 + $0x68] sm:$0xff]  ;;  %v211_v7 = vld [vmem:[#allocation7 + $0x60] sm:$0xff]  ;;  %v210_v8 = vld [vmem:[#allocation7 + $0x58] sm:$0xff]  ;;  %v187_v40 = vshrl.u32 %v186_v39, 7  ;;  %s425_s4 = sshll.u32 %s708_s2, 4  ;;  %s426_s4 = int_to_ptr.vmem [resolvable:$true] %s425_s4 }
  0x3f   :  { %477 = vmatpush3.msra.mxu0 %v87_v1  ;;  %484 = vmatpush3.msra.mxu1 %v214_v4  ;;  %v209_v9 = vld [vmem:[#allocation7 + $0x50] sm:$0xff]  ;;  %v208_v10 = vld [vmem:[#allocation7 + $0x48] sm:$0xff]  ;;  %v207_v11 = vld [vmem:[#allocation7 + $0x40] sm:$0xff]  ;;  %s671_s17 = scalar_lea.vmem %s426_s4, 128  ;;  %p676_p12 = scmp.lt.s32.totalorder %s426_s4, %s426_s4 }
  0x40   :  { %478 = vmatprep.subr.mxu0 %v706_v0  ;;  %485 = vmatprep.subr.mxu1 %v706_v0  ;;  %v206_v12 = vld [vmem:[#allocation7 + $0x38] sm:$0xff]  ;;  %v205_v13 = vld [vmem:[#allocation7 + $0x30] sm:$0xff]  ;;  %v204_v14 = vld [vmem:[#allocation7 + $0x28] sm:$0xff]  ;;  %v785_v42 = vsub.s32 0, %v187_v40  ;;  %p672_p11 = scmp.ne.s32.totalorder %s426_s4, %s671_s17  ;;  %p677_p13 = scmp.lt.s32.totalorder %s671_s17, %s671_s17 }
  0x41   :  { %479 = vmatpush3.msra.mxu0 %v86_v2  ;;  %486 = vmatpush3.msra.mxu1 %v213_v5  ;;  %v203_v15 = vld [vmem:[#allocation7 + $0x20] sm:$0xff]  ;;  %v202_v16 = vld [vmem:[#allocation7 + $0x18] sm:$0xff]  ;;  %v201_v17 = vld [vmem:[#allocation7 + $0x10] sm:$0xff] }
  0x42   :  { %481 = vmatmul.mubr.msk.f32.vlgmr.msra.gmra.mxu0 %vm88_vm1, %v85_v3  ;;  %518 = vmatprep.subr.mxu0 %v706_v0  ;;  %v200_v18 = vld [vmem:[#allocation7 + $0x8] sm:$0xff]  ;;  %v199_v19 = vld [vmem:[#allocation7] sm:$0xff]  ;;  %v336_v54 = vld [vmem:[#allocation8 + $0x78] sm:$0xff]  ;;  %p678_p0 = por %p677_p13, %p676_p12 }
  0x43   :  { %550 = vmatprep.mubr.msk.f32.mxu0 %vm707_vm0, %v706_v0  ;;  %487 = vmatprep.subr.mxu1 %v706_v0  ;;  %v162_v41 = vld [vmem:[#allocation10] sm:$0x1]  ;;  %v163_v45 = vld [vmem:[#allocation10 + $0x1] sm:$0x1]  ;;  %v335_v55 = vld [vmem:[#allocation8 + $0x70] sm:$0xff] }
  0x44   :  { %488 = vmatpush3.msra.mxu1 %v212_v6  ;;  %519 = vmatpush3.msra.mxu0 %v336_v54  ;;  %v334_v56 = vld [vmem:[#allocation8 + $0x68] sm:$0xff]  ;;  %v333_v57 = vld [vmem:[#allocation8 + $0x60] sm:$0xff]  ;;  %v332_v58 = vld [vmem:[#allocation8 + $0x58] sm:$0xff]  ;;  %p679_p1 = pnand %p678_p0, %p672_p11 }
  0x45   :  { %489 = vmatprep.subr.mxu1 %v706_v0  ;;  %520 = vmatprep.subr.mxu0 %v706_v0  ;;  %v331_v59 = vld [vmem:[#allocation8 + $0x50] sm:$0xff]  ;;  %v330_v60 = vld [vmem:[#allocation8 + $0x48] sm:$0xff]  ;;  %v329_v61 = vld [vmem:[#allocation8 + $0x40] sm:$0xff] }
  0x46   :  { %490 = vmatpush3.msra.mxu1 %v211_v7  ;;  %521 = vmatpush3.msra.mxu0 %v335_v55  ;;  %v328_v62 = vld [vmem:[#allocation8 + $0x38] sm:$0xff]  ;;  %v327_v63 = vld [vmem:[#allocation8 + $0x30] sm:$0xff]  ;;  %v326_v1 = vld [vmem:[#allocation8 + $0x28] sm:$0xff] }
  0x47   :  { %491 = vmatprep.subr.mxu1 %v706_v0  ;;  %522 = vmatprep.subr.mxu0 %v706_v0  ;;  %v325_v2 = vld [vmem:[#allocation8 + $0x20] sm:$0xff]  ;;  %v324_v3 = vld [vmem:[#allocation8 + $0x18] sm:$0xff]  ;;  %v323_v4 = vld [vmem:[#allocation8 + $0x10] sm:$0xff] }
  0x48   :  { %492 = vmatpush3.msra.mxu1 %v210_v8  ;;  %523 = vmatpush3.msra.mxu0 %v334_v56  ;;  %v322_v5 = vld [vmem:[#allocation8 + $0x8] sm:$0xff]  ;;  %v321_v6 = vld [vmem:[#allocation8] sm:$0xff] }
  0x49   :  { %493 = vmatprep.subr.mxu1 %v706_v0  ;;  %524 = vmatprep.subr.mxu0 %v706_v0 }
  0x4a   :  { %494 = vmatpush3.msra.mxu1 %v209_v9  ;;  %525 = vmatpush3.msra.mxu0 %v333_v57 }
  0x4b   :  { %495 = vmatprep.subr.mxu1 %v706_v0  ;;  %526 = vmatprep.subr.mxu0 %v706_v0 }
  0x4c   :  { %496 = vmatpush3.msra.mxu1 %v208_v10  ;;  %527 = vmatpush3.msra.mxu0 %v332_v58 }
  0x4d   :  { %497 = vmatprep.subr.mxu1 %v706_v0  ;;  %528 = vmatprep.subr.mxu0 %v706_v0 }
  0x4e   :  { %498 = vmatpush3.msra.mxu1 %v207_v11  ;;  %529 = vmatpush3.msra.mxu0 %v331_v59 }
  0x4f   :  { %499 = vmatprep.subr.mxu1 %v706_v0  ;;  %530 = vmatprep.subr.mxu0 %v706_v0 }
  0x50   :  { %500 = vmatpush3.msra.mxu1 %v206_v12  ;;  %531 = vmatpush3.msra.mxu0 %v330_v60 }
  0x51   :  { %501 = vmatprep.subr.mxu1 %v706_v0  ;;  %532 = vmatprep.subr.mxu0 %v706_v0 }
  0x52   :  { %502 = vmatpush3.msra.mxu1 %v205_v13  ;;  %533 = vmatpush3.msra.mxu0 %v329_v61 }
  0x53   :  { %503 = vmatprep.subr.mxu1 %v706_v0  ;;  %534 = vmatprep.subr.mxu0 %v706_v0 }
  0x54   :  { %504 = vmatpush3.msra.mxu1 %v204_v14  ;;  %535 = vmatpush3.msra.mxu0 %v328_v62 }
  0x55   :  { %505 = vmatprep.subr.mxu1 %v706_v0  ;;  %536 = vmatprep.subr.mxu0 %v706_v0 }
  0x56   :  { %506 = vmatpush3.msra.mxu1 %v203_v15  ;;  %537 = vmatpush3.msra.mxu0 %v327_v63 }
  0x57   :  { %507 = vmatprep.subr.mxu1 %v706_v0  ;;  %538 = vmatprep.subr.mxu0 %v706_v0 }
  0x58   :  { %508 = vmatpush3.msra.mxu1 %v202_v16  ;;  %539 = vmatpush3.msra.mxu0 %v326_v1 }
  0x59   :  { %509 = vmatprep.subr.mxu1 %v706_v0  ;;  %540 = vmatprep.subr.mxu0 %v706_v0 }
  0x5a   :  { %510 = vmatpush3.msra.mxu1 %v201_v17  ;;  %541 = vmatpush3.msra.mxu0 %v325_v2 }
  0x5b   :  { %511 = vmatprep.subr.mxu1 %v706_v0  ;;  %542 = vmatprep.subr.mxu0 %v706_v0 }
  0x5c   :  { %512 = vmatpush3.msra.mxu1 %v200_v18  ;;  %543 = vmatpush3.msra.mxu0 %v324_v3 }
  0x5d   :  { %513 = vmatprep.subr.mxu1 %v706_v0  ;;  %544 = vmatprep.subr.mxu0 %v706_v0 }
  0x5e   :  { %514 = vmatpush3.msra.mxu1 %v199_v19  ;;  %545 = vmatpush3.msra.mxu0 %v323_v4 }
  0x5f   :  { %546 = vmatprep.subr.mxu0 %v706_v0 }
  0x60   :  { %547 = vmatpush3.msra.mxu0 %v322_v5 }
  0x61   :  { %548 = vmatprep.subr.mxu0 %v706_v0 }
  0x62   :  { %549 = vmatpush3.msra.mxu0 %v321_v6 }
 0x102   :  { %v158_v20 = vpop.f32.mrf.mxu0 }
 0x103   :  { %v164_v21 = vrot.slane %v158_v20, 4 }
 0x104   :  { %v482_v22 = vpop.f32.mrf.mxu0 }
 0x105   :  { %v165_v23 = vadd.f32 %v164_v21, %v158_v20 }
 0x107   :  { %v166_v24 = vrot.slane %v165_v23, 2 }
 0x109   :  { %v167_v25 = vadd.f32 %v166_v24, %v165_v23 }
 0x10b   :  { %v168_v26 = vrot.slane %v167_v25, 1 }
 0x10d   :  { %v169_v27 = vadd.f32 %v168_v26, %v167_v25  ;;  %v285_v25 = vld [vmem:[#allocation10 + $0x2] sm:$0x1] }
 0x10f   :  { %v171_v28 = vmul.f32 0.125, %v169_v27 }
 0x111   :  { %v172_v29 = vsub.f32 %v158_v20, %v171_v28 }
 0x113   :  { %v173_v30 = vmul.f32 %v172_v29, %v172_v29 }
 0x115   :  { %v174_v31 = vrot.slane %v173_v30, 4 }
 0x117   :  { %v175_v32 = vadd.f32 %v174_v31, %v173_v30 }
 0x119   :  { %v176_v33 = vrot.slane %v175_v32, 2 }
 0x11b   :  { %v177_v34 = vadd.f32 %v176_v33, %v175_v32 }
 0x11d   :  { %v178_v35 = vrot.slane %v177_v34, 1 }
 0x11f   :  { %v179_v36 = vadd.f32 %v178_v35, %v177_v34 }
 0x121   :  { %v180_v37 = vmul.f32 0.125, %v179_v36 }
 0x123   :  { %v181_v38 = vadd.f32 1e-05, %v180_v37  ;;  %v437_v37 = vld [vmem:[#allocation10 + $0x4] ss:$0 sm:$0xff] }
 0x125   :  { %563 = vrsqrt.f32 %v181_v38 }
 0x132   :  { %v564_v43 = vpop.eup %563 }
 0x133   :  { %v183_v44 = vmul.f32 %v564_v43, %v162_v41 }
 0x135   :  { %v184_v46 = vmul.f32 %v183_v44, %v171_v28  ;;  %v189_v47 = vrot.slane %v183_v44, %v785_v42  ;;  %v286_v28 = vld [vmem:[#allocation10 + $0x3] sm:$0x1] }
 0x137   :  { %v185_v48 = vsub.f32 %v163_v45, %v184_v46  ;;  %v190_v49 = vmul.f32 %v189_v47, %v158_v20 }
 0x139   :  { %v194_v50 = vrot.slane %v185_v48, %v785_v42 }
 0x13b   :  { %v195_v51 = vadd.f32 %v194_v50, %v190_v49 }
 0x13d   :  { %vm196_vm2 = vcmp.ge.f32.partialorder %v195_v51, 0.0  ;;  %v197_v52 = vmul.f32 0.01, %v195_v51 }
 0x13f   :  { %v198_v53 = vsel %vm196_vm2, %v195_v51, %v197_v52 }
 0x140   :  { %516 = vmatmul.mubr.f32.vlgmr.msra.gmra.mxu1 %v198_v53 }
 0x200   :  { %v281_v7 = vpop.f32.mrf.mxu1 }
 0x201   :  { %v287_v8 = vrot.slane %v281_v7, 4 }
 0x202   :  { %v517_v9 = vpop.f32.mrf.mxu1 }
 0x203   :  { %v288_v10 = vadd.f32 %v287_v8, %v281_v7 }
 0x205   :  { %v289_v11 = vrot.slane %v288_v10, 2 }
 0x207   :  { %v290_v12 = vadd.f32 %v289_v11, %v288_v10 }
 0x209   :  { %v291_v13 = vrot.slane %v290_v12, 1 }
 0x20b   :  { %v292_v14 = vadd.f32 %v291_v13, %v290_v12 }
 0x20d   :  { %v293_v15 = vmul.f32 0.125, %v292_v14 }
 0x20f   :  { %v294_v16 = vsub.f32 %v281_v7, %v293_v15 }
 0x211   :  { %v295_v17 = vmul.f32 %v294_v16, %v294_v16 }
 0x213   :  { %v296_v18 = vrot.slane %v295_v17, 4 }
 0x215   :  { %v297_v19 = vadd.f32 %v296_v18, %v295_v17 }
 0x217   :  { %v298_v20 = vrot.slane %v297_v19, 2 }
 0x219   :  { %v299_v21 = vadd.f32 %v298_v20, %v297_v19 }
 0x21b   :  { %v300_v22 = vrot.slane %v299_v21, 1 }
 0x21d   :  { %v301_v23 = vadd.f32 %v300_v22, %v299_v21 }
 0x21f   :  { %v302_v24 = vmul.f32 0.125, %v301_v23 }
 0x221   :  { %v303_v0 = vadd.f32 1e-05, %v302_v24 }
 0x223   :  { %565 = vrsqrt.f32 %v303_v0 }
 0x230   :  { %v566_v26 = vpop.eup %565 }
 0x231   :  { %v305_v27 = vmul.f32 %v566_v26, %v285_v25 }
 0x233   :  { %v306_v29 = vmul.f32 %v305_v27, %v293_v15  ;;  %v311_v30 = vrot.slane %v305_v27, %v785_v42 }
 0x235   :  { %v307_v31 = vsub.f32 %v286_v28, %v306_v29  ;;  %v312_v32 = vmul.f32 %v311_v30, %v281_v7 }
 0x237   :  { %v316_v33 = vrot.slane %v307_v31, %v785_v42 }
 0x239   :  { %v317_v34 = vadd.f32 %v316_v33, %v312_v32 }
 0x23b   :  { %vm318_vm3 = vcmp.ge.f32.partialorder %v317_v34, 0.0  ;;  %v319_v35 = vmul.f32 0.01, %v317_v34 }
 0x23d   :  { %v320_v36 = vsel %vm318_vm3, %v317_v34, %v319_v35 }
 0x23e   :  { %551 = vmatmul.mubr.f32.vlgmr.msra.gmra.mxu0 %v320_v36 }
 0x2fe   :  { %v408_v38 = vpop.f32.mrf.mxu0 }
 0x2ff   :  { %v409_v39 = vadd.f32 %v437_v37, %v408_v38 }
 0x300   :  { %v552_v40 = vpop.f32.mrf.mxu0 }
 0x301   :  { %v438_v41 = vmul.f32 -1.442695, %v409_v39 }
 0x303   :  { %567 = vpow2.f32 %v438_v41 }
 0x310   :  { %v568_v43 = vpop.eup %567 }
 0x311   :  { %v415_v44 = vadd.f32 1.0, %v568_v43 }
 0x313   :  { %569 = vrcp.f32 %v415_v44 }
 0x320   :  { %v570_v45 = vpop.eup %569 }
 0x321   :  { %418 = vst [vmem:[#allocation11] sm:$0xff] %v570_v45 }
 0x322   :  { %682 = shalt.err (!%p679_p1)
}
 0x323   :  { %428 = dma.vmem_to_hbm [thread:$0]  %s426_s4, 128, %s814_s5, [#allocation4]  }
 0x324   :  { %697 = dma.done.wait [#allocation4], 128  }
 0x325   :  { %698 = vsyncadd [#allocation4], 4294967168 }
 0x326   :  { %432 = vsyncpa [#allocation3], 1 }
 0x327   :  { %433 = vsyncpa [#allocation6], 1 }
 0x328   :  { %434 = vsyncpa [#allocation9], 1 }
 0x329   :  { %435 = vsyncpa [#allocation4], 1 }

</bundles_post_ra>
